<compile_context>
chip_gen: v6e
topology: v6e:2x2x1
jax: 0.10.0
libtpu: 0.0.40
codegen_flags: <defaults>
</compile_context>

<pallas_src>
import functools

import jax
import jax.numpy as jnp
from jax.experimental import pallas as pl
from jax.experimental.pallas import tpu as pltpu


# ----------------------------- Pallas kernel ------------------------------ #

def actor_mlp_kernel(s_ref, w1_ref, b1_ref, w2_ref, b2_ref, w3_ref, b3_ref,
                     meanT_ref, *, max_action):
    """One batch tile of the 3-layer tanh MLP.

    s_ref:     (tb, S) f32  -- raw states, contiguous in HBM (S is trailing dim)
    w*:        (out, in) bf16 resident weights;  b*: (out, 1) f32 biases
    meanT_ref: (A, tb) f32  -- batch on the lane axis (lane-dense stores)
    """
    # In-kernel cast to bf16 (removes a wrapper-side HBM round trip); contract
    # directly over the state dim (w1 @ s.T) so batch lands on lanes without a
    # separate wrapper transpose.
    s_bf = s_ref[...].astype(jnp.bfloat16)                       # (tb, S)
    x = jnp.tanh(
        jax.lax.dot_general(w1_ref[...], s_bf,
                            (((1,), (1,)), ((), ())),
                            preferred_element_type=jnp.float32)
        + b1_ref[...])                                           # (H, tb) f32
    x = jnp.tanh(
        jnp.dot(w2_ref[...], x.astype(w2_ref.dtype),
                preferred_element_type=jnp.float32)
        + b2_ref[...])                                           # (H, tb) f32
    mean = max_action * jnp.tanh(
        jnp.dot(w3_ref[...], x.astype(w3_ref.dtype),
                preferred_element_type=jnp.float32)
        + b3_ref[...])                                           # (A, tb) f32
    meanT_ref[...] = mean.astype(meanT_ref.dtype)


# ------------------------------- wrapper ----------------------------------- #

def _round_up(x, m):
    return ((x + m - 1) // m) * m


def _tensorcores_per_chip():
    """2 for v7x (two TensorCores per chip), 1 for v5e/v6e and on failure."""
    try:
        kind = jax.devices()[0].device_kind.lower()
    except Exception:
        return 1
    return 2 if ("v7" in kind or "7x" in kind) else 1


def actor_forward(s, params, *, max_action, batch_tile=8192,
                  tensorcores_per_chip=None, transpose_output=True):
    """Actor forward pass with one fused Pallas kernel.

    s: (B, state_dim) float32.
    params: w1 (H,S), w2 (H,H), w3 (A,H) in bf16 (PyTorch (out,in) layout);
            b1 (H,1), b2 (H,1), b3 (A,1) in f32.
    Returns mean: (B, action_dim) f32 (or (action_dim, B) if
    transpose_output=False, for consumers that can take the lane-dense layout).
    """
    w1, b1 = params["w1"], params["b1"]
    w2, b2 = params["w2"], params["b2"]
    w3, b3 = params["w3"], params["b3"]

    B, S = s.shape
    H = w1.shape[0]
    A = w3.shape[0]

    if tensorcores_per_chip is None:
        tensorcores_per_chip = _tensorcores_per_chip()

    # Lane-dense batch tile (multiple of 128).  Large default tile: per-tile
    # VMEM is only a few MiB even at tb=8192, and fewer grid steps amortize the
    # fixed ~0.35 us per-step overhead.
    tb_cap = max(128, _round_up(batch_tile, 128))
    tb = min(tb_cap, _round_up(B, 128))
    # Only on multi-TensorCore chips (v7x): split a single big tile into two
    # grid steps so the "parallel" batch axis shards across cores, and only
    # when each half stays >= 1024 lanes (otherwise the extra step + padding
    # is pure overhead).
    if tensorcores_per_chip >= 2 and _round_up(B, tb) == tb and tb >= 2048:
        tb = _round_up(tb // 2, 128)
    Bp = _round_up(B, tb)
    grid = (Bp // tb,)

    # Keep the raw f32 input; cast happens in-kernel.  Pad only when the batch
    # is not a multiple of the tile (typical PPO batches are powers of two, so
    # this is usually a no-op).  Padded columns are sliced off below.
    s_in = s if Bp == B else jnp.pad(s, ((0, Bp - B), (0, 0)))

    # Accurate (small) VMEM budget: double-buffered streamed tiles + hidden
    # activations + resident weights + headroom; capped so it is safe on
    # v5e / v6e / v7x (64 MiB physical, 32 MiB scoped default).
    weight_bytes = (S * H + H * H + H * A) * 2 + (2 * H + A) * 4
    est = (2 * S * tb * 4          # double-buffered f32 input tiles
           + 2 * A * tb * 4        # double-buffered f32 output tiles
           + 4 * H * tb * 4        # hidden activations / bf16 casts / temps
           + 2 * weight_bytes      # resident weights & biases
           + (1 << 20))            # headroom
    vmem_limit_bytes = int(min(max(est, 4 << 20), 32 << 20))

    kernel = functools.partial(actor_mlp_kernel, max_action=max_action)
    # Whole-array blocks with a constant index_map: the pipeline keeps them
    # resident in VMEM across batch tiles (block index never changes).
    full = lambda shape: pl.BlockSpec(shape, lambda i: (0, 0))

    meanT = pl.pallas_call(
        kernel,
        out_shape=jax.ShapeDtypeStruct((A, Bp), jnp.float32),
        grid=grid,
        in_specs=[
            pl.BlockSpec((tb, S), lambda i: (i, 0)),   # s, contiguous blocks
            full((H, S)), full((H, 1)),                # fc1
            full((H, H)), full((H, 1)),                # fc2
            full((A, H)), full((A, 1)),                # mean_layer
        ],
        out_specs=pl.BlockSpec((A, tb), lambda i: (0, i)),
        compiler_params=pltpu.CompilerParams(
            dimension_semantics=("parallel",),
            vmem_limit_bytes=vmem_limit_bytes),
    )(s_in, w1, b1, w2, b2, w3, b3)

    mean = meanT[:, :B]            # drop padded batch columns
    return mean.T if transpose_output else mean


# ------------------------- deterministic init ----------------------------- #

def orthogonal(key, shape, gain=1.0):
    """Mimics torch.nn.init.orthogonal_ for a 2-D weight of `shape`."""
    rows, cols = shape
    flat = jax.random.normal(key, (rows, cols), dtype=jnp.float32)
    if rows < cols:
        flat = flat.T
    q, r = jnp.linalg.qr(flat)
    d = jnp.sign(jnp.diagonal(r))
    q = q * d[None, :]
    if rows < cols:
        q = q.T
    return gain * q


def init_actor_params(key, state_dim, hidden_width, action_dim):
    k1, k2, k3 = jax.random.split(key, 3)
    # PyTorch Linear weight layout (out, in) kept as-is (kernel computes W @ x
    # with batch on lanes).  Weights stored in bf16, biases in f32.
    w1 = orthogonal(k1, (hidden_width, state_dim), gain=1.0)
    w2 = orthogonal(k2, (hidden_width, hidden_width), gain=1.0)
    w3 = orthogonal(k3, (action_dim, hidden_width), gain=0.01)
    params = {
        "w1": w1.astype(jnp.bfloat16),
        "b1": jnp.zeros((hidden_width, 1), jnp.float32),
        "w2": w2.astype(jnp.bfloat16),
        "b2": jnp.zeros((hidden_width, 1), jnp.float32),
        "w3": w3.astype(jnp.bfloat16),
        "b3": jnp.zeros((action_dim, 1), jnp.float32),
        # log_std exists in the module but is unused by forward():
        "log_std": jnp.zeros((1, action_dim), jnp.float32),
    }
    return params


# TODO(synk): BarrierLayer (safety_layer_enabled / safety_layer_no_grad) is
# not defined in the provided source; forward() is implemented for the
# safety-layer-disabled path only.
# TODO(synk): bf16 tanh for the hidden layers (EUP throughput win on v6e/v7x)
# is deliberately not enabled; keeping f32 tanh matches the reference to the
# verified 2e-3 tolerance on all chips.


def ref_forward(s, params, max_action):
    """Pure-JAX reference mirroring the kernel's bf16-input / f32-accum math."""
    f32 = jnp.float32
    hi = jax.lax.Precision.HIGHEST
    w1 = params["w1"].astype(f32)
    w2 = params["w2"].astype(f32)
    w3 = params["w3"].astype(f32)
    b1, b2, b3 = params["b1"].T, params["b2"].T, params["b3"].T
    x = s.astype(jnp.bfloat16).astype(f32)
    x = jnp.tanh(jnp.dot(x, w1.T, precision=hi) + b1)
    x = x.astype(jnp.bfloat16).astype(f32)
    x = jnp.tanh(jnp.dot(x, w2.T, precision=hi) + b2)
    x = x.astype(jnp.bfloat16).astype(f32)
    return max_action * jnp.tanh(jnp.dot(x, w3.T, precision=hi) + b3)


# --------------------------------- main ------------------------------------ #

if __name__ == "__main__":
    state_dim, hidden_width, action_dim = 16, 32, 4
    batch = 8
    max_action = 2.0

    key = jax.random.PRNGKey(0)
    k_param, k_input = jax.random.split(key)
    params = init_actor_params(k_param, state_dim, hidden_width, action_dim)
    s = jax.random.normal(k_input, (batch, state_dim), dtype=jnp.float32)

    mean = actor_forward(s, params, max_action=max_action)
    mean = jax.block_until_ready(mean)

    ref = ref_forward(s, params, max_action)
    assert mean.shape == (batch, action_dim)
    assert jnp.allclose(mean, ref, atol=2e-3, rtol=2e-3), (
        f"max abs err {jnp.max(jnp.abs(mean - ref))}")

    print("KERNEL_OK")
</pallas_src>

<mosaic_0001>
module attributes {stable_mosaic.version = 11 : i64} {
  func.func @actor_mlp_kernel(%arg0: i32, %arg1: memref<128x16xf32, #tpu.memory_space<vmem>>, %arg2: memref<32x16xbf16, #tpu.memory_space<vmem>>, %arg3: memref<32x1xf32, #tpu.memory_space<vmem>>, %arg4: memref<32x32xbf16, #tpu.memory_space<vmem>>, %arg5: memref<32x1xf32, #tpu.memory_space<vmem>>, %arg6: memref<4x32xbf16, #tpu.memory_space<vmem>>, %arg7: memref<4x1xf32, #tpu.memory_space<vmem>>, %arg8: memref<4x128xf32, #tpu.memory_space<vmem>>) attributes {dimension_semantics = [#tpu.dimension_semantics<parallel>], iteration_bounds = array<i64: 1>, scalar_prefetch = 0 : i64, scratch_operands = 0 : i64, tpu.core_type = #tpu.core_type<tc>, window_params = [{transform_indices = @transform_0, window_bounds = array<i64: 128, 16>}, {pipeline_mode = #tpu.pipeline_mode<synchronous>, transform_indices = @transform_1, window_bounds = array<i64: 32, 16>}, {pipeline_mode = #tpu.pipeline_mode<synchronous>, transform_indices = @transform_2, window_bounds = array<i64: 32, 1>}, {pipeline_mode = #tpu.pipeline_mode<synchronous>, transform_indices = @transform_3, window_bounds = array<i64: 32, 32>}, {pipeline_mode = #tpu.pipeline_mode<synchronous>, transform_indices = @transform_4, window_bounds = array<i64: 32, 1>}, {pipeline_mode = #tpu.pipeline_mode<synchronous>, transform_indices = @transform_5, window_bounds = array<i64: 4, 32>}, {pipeline_mode = #tpu.pipeline_mode<synchronous>, transform_indices = @transform_6, window_bounds = array<i64: 4, 1>}, {transform_indices = @transform_7, window_bounds = array<i64: 4, 128>}]} {
    %c0 = arith.constant 0 : index
    %c0_0 = arith.constant 0 : index
    %0 = vector.load %arg1[%c0, %c0_0] : memref<128x16xf32, #tpu.memory_space<vmem>>, vector<128x16xf32>
    %1 = arith.truncf %0 : vector<128x16xf32> to vector<128x16xbf16>
    %c0_1 = arith.constant 0 : index
    %c0_2 = arith.constant 0 : index
    %2 = vector.load %arg2[%c0_1, %c0_2] : memref<32x16xbf16, #tpu.memory_space<vmem>>, vector<32x16xbf16>
    %cst = arith.constant dense<0.000000e+00> : vector<32x128xf32>
    %3 = tpu.matmul %2, %1, %cst {dimension_numbers = #tpu.dot_dimension_numbers<[1], [1], [0], [0], [0, 0, 1, 0], [], []>} : vector<32x16xbf16>, vector<128x16xbf16>, vector<32x128xf32> -> vector<32x128xf32>
    %c0_3 = arith.constant 0 : index
    %c0_4 = arith.constant 0 : index
    %4 = vector.load %arg3[%c0_3, %c0_4] : memref<32x1xf32, #tpu.memory_space<vmem>>, vector<32x1xf32>
    %5 = vector.broadcast %4 : vector<32x1xf32> to vector<32x128xf32>
    %6 = arith.addf %3, %5 : vector<32x128xf32>
    %7 = math.tanh %6 : vector<32x128xf32>
    %c0_5 = arith.constant 0 : index
    %c0_6 = arith.constant 0 : index
    %8 = vector.load %arg4[%c0_5, %c0_6] : memref<32x32xbf16, #tpu.memory_space<vmem>>, vector<32x32xbf16>
    %9 = arith.truncf %7 : vector<32x128xf32> to vector<32x128xbf16>
    %cst_7 = arith.constant dense<0.000000e+00> : vector<32x128xf32>
    %10 = tpu.matmul %8, %9, %cst_7 {dimension_numbers = #tpu.dot_dimension_numbers<[1], [0], [0], [1], [0, 0, 1, 1], [], []>} : vector<32x32xbf16>, vector<32x128xbf16>, vector<32x128xf32> -> vector<32x128xf32>
    %c0_8 = arith.constant 0 : index
    %c0_9 = arith.constant 0 : index
    %11 = vector.load %arg5[%c0_8, %c0_9] : memref<32x1xf32, #tpu.memory_space<vmem>>, vector<32x1xf32>
    %12 = vector.broadcast %11 : vector<32x1xf32> to vector<32x128xf32>
    %13 = arith.addf %10, %12 : vector<32x128xf32>
    %14 = math.tanh %13 : vector<32x128xf32>
    %c0_10 = arith.constant 0 : index
    %c0_11 = arith.constant 0 : index
    %15 = vector.load %arg6[%c0_10, %c0_11] : memref<4x32xbf16, #tpu.memory_space<vmem>>, vector<4x32xbf16>
    %16 = arith.truncf %14 : vector<32x128xf32> to vector<32x128xbf16>
    %cst_12 = arith.constant dense<0.000000e+00> : vector<4x128xf32>
    %17 = tpu.matmul %15, %16, %cst_12 {dimension_numbers = #tpu.dot_dimension_numbers<[1], [0], [0], [1], [0, 0, 1, 1], [], []>} : vector<4x32xbf16>, vector<32x128xbf16>, vector<4x128xf32> -> vector<4x128xf32>
    %c0_13 = arith.constant 0 : index
    %c0_14 = arith.constant 0 : index
    %18 = vector.load %arg7[%c0_13, %c0_14] : memref<4x1xf32, #tpu.memory_space<vmem>>, vector<4x1xf32>
    %19 = vector.broadcast %18 : vector<4x1xf32> to vector<4x128xf32>
    %20 = arith.addf %17, %19 : vector<4x128xf32>
    %21 = math.tanh %20 : vector<4x128xf32>
    %cst_15 = arith.constant 2.000000e+00 : f32
    %22 = vector.broadcast %cst_15 : f32 to vector<4x128xf32>
    %23 = arith.mulf %22, %21 : vector<4x128xf32>
    %c0_16 = arith.constant 0 : index
    %c0_17 = arith.constant 0 : index
    %24 = vector.load %arg8[%c0_16, %c0_17] : memref<4x128xf32, #tpu.memory_space<vmem>>, vector<4x128xf32>
    tpu.vector_store %arg8[%c0_16, %c0_17], %23 {strides = array<i32>} : memref<4x128xf32, #tpu.memory_space<vmem>>, vector<4x128xf32>,
    return
  }
  func.func @transform_0(%arg0: i32) -> (i32, i32) {
    %c0_i32 = arith.constant 0 : i32
    %c0_i32_0 = arith.constant 0 : i32
    return %arg0, %c0_i32 : i32, i32
  }
  func.func @transform_1(%arg0: i32) -> (i32, i32) {
    %c0_i32 = arith.constant 0 : i32
    %c0_i32_0 = arith.constant 0 : i32
    %c0_i32_1 = arith.constant 0 : i32
    return %c0_i32, %c0_i32_0 : i32, i32
  }
  func.func @transform_2(%arg0: i32) -> (i32, i32) {
    %c0_i32 = arith.constant 0 : i32
    %c0_i32_0 = arith.constant 0 : i32
    %c0_i32_1 = arith.constant 0 : i32
    return %c0_i32, %c0_i32_0 : i32, i32
  }
  func.func @transform_3(%arg0: i32) -> (i32, i32) {
    %c0_i32 = arith.constant 0 : i32
    %c0_i32_0 = arith.constant 0 : i32
    %c0_i32_1 = arith.constant 0 : i32
    return %c0_i32, %c0_i32_0 : i32, i32
  }
  func.func @transform_4(%arg0: i32) -> (i32, i32) {
    %c0_i32 = arith.constant 0 : i32
    %c0_i32_0 = arith.constant 0 : i32
    %c0_i32_1 = arith.constant 0 : i32
    return %c0_i32, %c0_i32_0 : i32, i32
  }
  func.func @transform_5(%arg0: i32) -> (i32, i32) {
    %c0_i32 = arith.constant 0 : i32
    %c0_i32_0 = arith.constant 0 : i32
    %c0_i32_1 = arith.constant 0 : i32
    return %c0_i32, %c0_i32_0 : i32, i32
  }
  func.func @transform_6(%arg0: i32) -> (i32, i32) {
    %c0_i32 = arith.constant 0 : i32
    %c0_i32_0 = arith.constant 0 : i32
    %c0_i32_1 = arith.constant 0 : i32
    return %c0_i32, %c0_i32_0 : i32, i32
  }
  func.func @transform_7(%arg0: i32) -> (i32, i32) {
    %c0_i32 = arith.constant 0 : i32
    %c0_i32_0 = arith.constant 0 : i32
    return %c0_i32, %arg0 : i32, i32
  }
}

</mosaic_0001>

<bundles_post_ra>
// kernel: tpu_custom_call.1
= control target key start
LH: loop header
LB: loop body
LE: loop exit
PB: predicated region body
PF: predicated region fallthrough
CT: control target
= control target key end

     0   :  { %vm90_vm0 = vcmask 130048   ;;  %v463_v5 = vmov 0   ;;  %s621_s0 = inlined_call_operand.vmem [shape: f32[128,16], index: 0, kind: input, shape index: {}]   ;;  %s622_s1 = inlined_call_operand.vmem [shape: bf16[32,16], index: 1, kind: input, shape index: {}]   ;;  %s623_s2 = inlined_call_operand.vmem [shape: f32[32,1], index: 2, kind: input, shape index: {}]   ;;  %s624_s3 = inlined_call_operand.vmem [shape: bf16[32,32], index: 3, kind: input, shape index: {}]   ;;  %s625_s4 = inlined_call_operand.vmem [shape: f32[32,1], index: 4, kind: input, shape index: {}]   ;;  %s626_s5 = inlined_call_operand.vmem [shape: bf16[4,32], index: 5, kind: input, shape index: {}]   ;;  %s627_s6 = inlined_call_operand.vmem [shape: f32[4,1], index: 6, kind: input, shape index: {}]   ;;  %s628_s7 = inlined_call_operand.hbm [shape: f32[4,128], index: 7, kind: output, shape index: {}]  }
   0x1   :  { %v42_v0 = vld [vmem:[%s621_s0 + $0x70] sm:$0xff]  ;;  %v43_v1 = vld [vmem:[%s621_s0 + $0x78] sm:$0xff]  ;;  %v40_v2 = vld [vmem:[%s621_s0 + $0x60] sm:$0xff]  ;;  %417 = vset.pattern.permute.xlu0 %v463_v5  ;;  %418 = vset.pattern.permute.xlu1 %v463_v5 }
   0x2   :  { %v51_v3 = vpack.c.bf16 %v43_v1, %v42_v0  ;;  %v41_v4 = vld [vmem:[%s621_s0 + $0x68] sm:$0xff]  ;;  %v38_v8 = vld [vmem:[%s621_s0 + $0x50] sm:$0xff]  ;;  %v39_v9 = vld [vmem:[%s621_s0 + $0x58] sm:$0xff] }
   0x3   :  { %v50_v6 = vpack.c.bf16 %v41_v4, %v40_v2  ;;  %v419_v10 = vld [vmem:[%s622_s1] sm:$0xff]   ;;  %v58_v11 = vld [vmem:[%s623_s2 + $0x10] sm:$0xff]  ;;  %v49_v14 = vpack.c.bf16 %v39_v9, %v38_v8  ;;  %v59_v15 = vld [vmem:[%s623_s2 + $0x18] sm:$0xff] }
   0x4   :  { %405 = vmatprep.subr.msk.bf16.mxu0 %vm90_vm0, %v51_v3  ;;  %v119_v7 = vsel %vm90_vm0, %v51_v3, 0  ;;  %385 = vmatprep.mubr.msk.bf16.mxu0 %vm90_vm0, %v419_v10  ;;  %v56_v12 = vld [vmem:[%s623_s2] sm:$0xff]  ;;  %v57_v16 = vld [vmem:[%s623_s2 + $0x8] sm:$0xff] }
   0x5   :  { %370 = vmatpush3.bf16.xpose.msra.mxu0 %v119_v7  ;;  %72 = vperm.xlu0 %417, %v58_v11   ;;  %v116_v13 = vsel %vm90_vm0, %v50_v6, 0 }
   0x6   :  { %406 = vmatprep.subr.msk.bf16.mxu0 %vm90_vm0, %v50_v6  ;;  %62 = vperm.xlu1 %418, %v56_v12  }
   0x7   :  { %12 = vsyncpa [#allocation3], 0  ;;  %v182_v17 = vld [vmem:[%s625_s4 + $0x10] sm:$0xff]  ;;  %v36_v18 = vld [vmem:[%s621_s0 + $0x40] sm:$0xff]  ;;  %v113_v21 = vsel %vm90_vm0, %v49_v14, 0  ;;  %vm214_vm1 = vcmask 261120  }
   0x8   :  { %v37_v19 = vld [vmem:[%s621_s0 + $0x48] sm:$0xff]  ;;  %v183_v20 = vld [vmem:[%s625_s4 + $0x18] sm:$0xff]  ;;  %v180_v23 = vld [vmem:[%s625_s4] sm:$0xff]  ;;  %v464_v0 = vmov 0.0   ;;  %vm465_vm2 = vmmov 0   ;;  %s466_s8 = smov [#allocation2]  }
   0x9   :  { %77 = vperm.xlu0 %417, %v59_v15   ;;  %v48_v22 = vpack.c.bf16 %v37_v19, %v36_v18  ;;  %v181_v24 = vld [vmem:[%s625_s4 + $0x8] sm:$0xff]  ;;  %v277_v25 = vld [vmem:[%s627_s6] sm:$0xf]  ;;  %v34_v26 = vld [vmem:[%s621_s0 + $0x30] sm:$0xff]  ;;  %s335_s9 = sshll.u32 %s466_s8, 4  ;;  %s336_s9 = int_to_ptr.vmem [resolvable:$true] %s335_s9 }
   0xa   :  { %67 = vperm.xlu1 %418, %v57_v16   ;;  %v35_v27 = vld [vmem:[%s621_s0 + $0x38] sm:$0xff]  ;;  %v32_v30 = vld [vmem:[%s621_s0 + $0x20] sm:$0xff]  ;;  %v33_v31 = vld [vmem:[%s621_s0 + $0x28] sm:$0xff]  ;;  %s441_s10 = scalar_lea.vmem %s336_s9, 64  ;;  %p446_p1 = scmp.lt.s32.totalorder %s336_s9, %s336_s9 }
   0xb   :  { %v110_v28 = vsel %vm90_vm0, %v48_v22, 0  ;;  %v47_v29 = vpack.c.bf16 %v35_v27, %v34_v26  ;;  %v46_v33 = vpack.c.bf16 %v33_v31, %v32_v30  ;;  %v30_v34 = vld [vmem:[%s621_s0 + $0x10] sm:$0xff]  ;;  %v31_v35 = vld [vmem:[%s621_s0 + $0x18] sm:$0xff]  ;;  %v28_v38 = vld [vmem:[%s621_s0] sm:$0xff]  ;;  %p442_p0 = scmp.ne.s32.totalorder %s336_s9, %s441_s10  ;;  %p447_p2 = scmp.lt.s32.totalorder %s441_s10, %s441_s10 }
   0xc   :  { %v45_v37 = vpack.c.bf16 %v31_v35, %v30_v34  ;;  %v29_v39 = vld [vmem:[%s621_s0 + $0x8] sm:$0xff]  ;;  %v421_v44 = vld [vmem:[%s624_s3] sm:$0xff]  }
   0xd   :  { %372 = vmatpush3.bf16.xpose.msra.mxu0 %v116_v13  ;;  %196 = vperm.xlu0 %417, %v182_v17   ;;  %v107_v32 = vsel %vm90_vm0, %v47_v29, 0  ;;  %v104_v36 = vsel %vm90_vm0, %v46_v33, 0  ;;  %v44_v41 = vpack.c.bf16 %v29_v39, %v28_v38  ;;  %v420_v43 = vld [vmem:[%s622_s1 + $0x8] sm:$0xff]   ;;  %v274_v19 = vld [vmem:[%s626_s5] sm:$0x3]  ;;  %p448_p3 = por %p447_p2, %p446_p1 }
   0xe   :  { %407 = vmatprep.subr.msk.bf16.mxu0 %vm90_vm0, %v49_v14  ;;  %201 = vperm.xlu1 %418, %v183_v20   ;;  %v101_v40 = vsel %vm90_vm0, %v45_v37, 0  ;;  %v422_v63 = vld [vmem:[%s624_s3 + $0x8] sm:$0xff]  }
   0xf   :  { %v98_v42 = vsel %vm90_vm0, %v44_v41, 0  ;;  %393 = vmatprep.mubr.msk.bf16.mxu1 %vm214_vm1, %v421_v44  ;;  %p449_p4 = pnand %p448_p3, %p442_p0 }
  0x11   :  { %186 = vperm.xlu0 %417, %v180_v23  }
  0x12   :  { %191 = vperm.xlu1 %418, %v181_v24  }
  0x15   :  { %374 = vmatpush3.bf16.xpose.msra.mxu0 %v113_v21  ;;  %280 = vperm.xlu0 %417, %v277_v25  }
  0x16   :  { %408 = vmatprep.subr.msk.bf16.mxu0 %vm90_vm0, %v48_v22 }
  0x1d   :  { %376 = vmatpush3.bf16.xpose.msra.mxu0 %v110_v28 }
  0x1e   :  { %409 = vmatprep.subr.msk.bf16.mxu0 %vm90_vm0, %v47_v29 }
  0x25   :  { %378 = vmatpush3.bf16.xpose.msra.mxu0 %v107_v32 }
  0x26   :  { %410 = vmatprep.subr.msk.bf16.mxu0 %vm90_vm0, %v46_v33 }
  0x2d   :  { %380 = vmatpush3.bf16.xpose.msra.mxu0 %v104_v36 }
  0x2e   :  { %411 = vmatprep.subr.msk.bf16.mxu0 %vm90_vm0, %v45_v37 }
  0x35   :  { %382 = vmatpush3.bf16.xpose.msra.mxu0 %v101_v40 }
  0x36   :  { %412 = vmatprep.subr.msk.bf16.mxu0 %vm90_vm0, %v44_v41 }
  0x3d   :  { %384 = vmatpush3.bf16.xpose.msra.mxu0 %v98_v42 }
  0x44   :  { %386 = vmatmul.mubr.msk.bf16.vlgmr.msra.gmra.mxu0 %vm90_vm0, %v420_v43 }
  0x80   :  { %v73_v45 = vpop.permute.xlu0 %72 }
  0x81   :  { %v63_v46 = vpop.permute.xlu1 %62 }
  0x84   :  { %v78_v50 = vpop.permute.xlu0 %77 }
  0x85   :  { %v68_v54 = vpop.permute.xlu1 %67 }
  0x88   :  { %v197_v1 = vpop.permute.xlu0 %196 }
  0x89   :  { %v202_v2 = vpop.permute.xlu1 %201 }
  0x8c   :  { %v187_v7 = vpop.permute.xlu0 %186 }
  0x8d   :  { %v192_v9 = vpop.permute.xlu1 %191 }
  0x90   :  { %v281_v20 = vpop.permute.xlu0 %280 }
 0x104   :  { %v387_v47 = vpop.f32.mrf.mxu0 }
 0x105   :  { %v164_v48 = vadd.f32 %v387_v47, %v73_v45 }
 0x106   :  { %v155_v49 = vpop.f32.mrf.mxu0 }
 0x107   :  { %v156_v51 = vadd.f32 %v155_v49, %v63_v46  ;;  %423 = vtanh.f32 %v164_v48 }
 0x108   :  { %v388_v52 = vpop.f32.mrf.mxu0 }
 0x109   :  { %v167_v53 = vadd.f32 %v388_v52, %v78_v50 }
 0x10a   :  { %v158_v55 = vpop.f32.mrf.mxu0 }
 0x10b   :  { %425 = vtanh.f32 %v167_v53  ;;  %v159_v56 = vadd.f32 %v158_v55, %v68_v54 }
 0x10c   :  { %427 = vtanh.f32 %v156_v51 }
 0x10d   :  { %429 = vtanh.f32 %v159_v56 }
 0x114   :  { %v424_v57 = vpop.eup %423 }
 0x118   :  { %v426_v58 = vpop.eup %425 }
 0x119   :  { %v428_v59 = vpop.eup %427  ;;  %v179_v60 = vpack.c.bf16 %v426_v58, %v424_v57 }
 0x11a   :  { %v430_v61 = vpop.eup %429 }
 0x11b   :  { %389 = vmatprep.subr.bf16.mxu1 %v179_v60  ;;  %v178_v62 = vpack.c.bf16 %v430_v61, %v428_v59 }
 0x11c   :  { %390 = vmatpush3.bf16.msra.mxu1 %v179_v60 }
 0x11d   :  { %391 = vmatprep.subr.bf16.mxu1 %v178_v62 }
 0x120   :  { %392 = vmatpush3.bf16.msra.mxu1 %v178_v62 }
 0x121   :  { %397 = vmatprep.subr.bf16.mxu1 %v464_v0 }
 0x123   :  { %394 = vmatmul.mubr.msk.bf16.vlgmr.msra.gmra.mxu1 %vm214_vm1, %v422_v63 }
 0x124   :  { %401 = vmatprep.mubr.msk.bf16.mxu1 %vm465_vm2, %v464_v0 }
 0x1e3   :  { %v395_v3 = vpop.f32.mrf.mxu1 }
 0x1e4   :  { %v264_v4 = vadd.f32 %v395_v3, %v197_v1 }
 0x1e5   :  { %v255_v5 = vpop.f32.mrf.mxu1 }
 0x1e6   :  { %431 = vtanh.f32 %v264_v4  ;;  %v256_v11 = vadd.f32 %v255_v5, %v187_v7 }
 0x1e7   :  { %v396_v6 = vpop.f32.mrf.mxu1 }
 0x1e8   :  { %v267_v8 = vadd.f32 %v396_v6, %v202_v2 }
 0x1e9   :  { %v258_v10 = vpop.f32.mrf.mxu1 }
 0x1ea   :  { %433 = vtanh.f32 %v267_v8  ;;  %v259_v12 = vadd.f32 %v258_v10, %v192_v9 }
 0x1ec   :  { %435 = vtanh.f32 %v259_v12 }
 0x1ed   :  { %437 = vtanh.f32 %v256_v11 }
 0x1f3   :  { %v432_v13 = vpop.eup %431 }
 0x1f7   :  { %v434_v14 = vpop.eup %433 }
 0x1f8   :  { %v276_v15 = vpack.c.bf16 %v434_v14, %v432_v13 }
 0x1f9   :  { %v436_v16 = vpop.eup %435 }
 0x1fa   :  { %398 = vmatpush3.bf16.msra.mxu1 %v276_v15  ;;  %v438_v17 = vpop.eup %437 }
 0x1fb   :  { %399 = vmatprep.subr.bf16.mxu1 %v464_v0  ;;  %v275_v18 = vpack.c.bf16 %v436_v16, %v438_v17 }
 0x1fe   :  { %400 = vmatpush3.bf16.msra.mxu1 %v275_v18 }
 0x201   :  { %402 = vmatmul.mubr.msk.bf16.vlgmr.msra.gmra.mxu1 %vm214_vm1, %v274_v19 }
 0x2c1   :  { %v320_v21 = vpop.f32.mrf.mxu1 }
 0x2c2   :  { %v321_v22 = vadd.f32 %v320_v21, %v281_v20 }
 0x2c3   :  { %v403_v23 = vpop.f32.mrf.mxu1 }
 0x2c4   :  { %439 = vtanh.f32 %v321_v22 }
 0x2c5   :  { %v323_v24 = vpop.f32.mrf.mxu1 }
 0x2c7   :  { %v404_v25 = vpop.f32.mrf.mxu1 }
 0x2d1   :  { %v440_v26 = vpop.eup %439 }
 0x2d2   :  { %v327_v27 = vmul.f32 2.0, %v440_v26 }
 0x2d4   :  { %328 = vst [vmem:[#allocation2] sm:$0xf] %v327_v27 }
 0x2d5   :  { %452 = shalt.err (!%p449_p4)
}
 0x2d6   :  { %338 = dma.vmem_to_hbm [thread:$0]  %s336_s9, 64, %s628_s7, [#allocation3]  }
 0x2d7   :  { %461 = dma.done.wait [#allocation3], 64  }
 0x2d8   :  { %462 = vsyncadd [#allocation3], 4294967232 }
 0x2d9   :  { %342 = vsyncpa [#allocation3], 1 }

</bundles_post_ra>
